<compile_context>
chip_gen: v5e
topology: v5e:2x2
jax: 0.10.0
libtpu: 0.0.40
codegen_flags: <defaults>
</compile_context>

<pallas_src>
import jax
import jax.numpy as jnp
from jax.experimental import pallas as pl
from jax.experimental.pallas import tpu as pltpu


def _sentiment_gating_kernel(x_ref, s_ref, wf_ref, bf_ref, gamma_ref, beta_ref,
                             out_ref, gate_ref):
    # Folded gate linear: gate = sigmoid(s @ (Wse @ Wg) + (bse @ Wg + bg)).
    gate = jax.nn.sigmoid(
        jnp.dot(s_ref[...], wf_ref[...], preferred_element_type=jnp.float32)
        + bf_ref[...])

    x = x_ref[...].astype(jnp.float32)
    # x * gate + x  ==  x * (gate + 1): residual fused into the multiply.
    gated = x * (gate + 1.0)

    # LayerNorm over d_model (eps=1e-5), f32 accumulation.  `gated` is reused
    # in-place for the centered values to keep f32 temporaries minimal.
    mean = jnp.mean(gated, axis=-1, keepdims=True)
    gated = gated - mean
    var = jnp.mean(gated * gated, axis=-1, keepdims=True)
    out = gated * jax.lax.rsqrt(var + 1e-5) * gamma_ref[...] + beta_ref[...]

    out_ref[...] = out.astype(out_ref.dtype)
    gate_ref[...] = gate.astype(gate_ref.dtype)


def _vmem_capacity_bytes():
    """Per-core VMEM capacity; conservative 64 MiB (v7x) if unknown."""
    try:
        cap = getattr(pltpu.get_tpu_info(), "vmem_capacity_bytes", None)
        if cap:
            return int(cap)
    except Exception:
        pass
    return 64 << 20


def _pick_tm(n_rows, d_model, sdim, x_itm, s_itm, gate_itm, tile_budget,
             min_grid_steps=8):
    """Row-tile size from a VMEM byte budget.

    Counts double-buffered I/O tiles plus ~4 full-width f32 LayerNorm
    temporaries, keeps >= min_grid_steps grid steps (so both v7x TensorCores
    get several tiles and DMA can be hidden), and prefers a tile that divides
    n_rows so no ragged/padded tile is ever needed.
    """
    align = 16 if x_itm == 2 else 8                 # bf16 packs 16 rows/sublane grp
    io_row = 2 * (2 * d_model * x_itm + sdim * s_itm + d_model * gate_itm)
    tmp_row = 4 * d_model * 4                       # f32 compute temporaries
    resident = sdim * d_model * 4 + 8 * d_model * 4  # Wfold + bias rows (f32 bound)
    tm = max((tile_budget - resident) // (io_row + tmp_row), align)
    tm = min(tm, 2048)
    if n_rows > align * min_grid_steps:
        tm = min(tm, max(align, n_rows // min_grid_steps))
    tm = max(align, (tm // align) * align)
    if n_rows <= tm:
        return n_rows                               # one full block (full-dim OK)
    t = tm                                          # prefer a divisor of n_rows
    while t >= align and n_rows % t != 0:
        t -= align
    return t if t >= align else tm                  # else ragged last tile (masked)


def _const_spec(shape):
    """Loop-invariant operand: constant index_map already skips re-DMA; single-
    buffer it so the second buffer's VMEM goes toward a larger row tile."""
    idx = lambda i: (0, 0)
    if hasattr(pl, "Buffered"):
        try:
            return pl.BlockSpec(shape, idx, pipeline_mode=pl.Buffered(1))
        except TypeError:
            pass
    return pl.BlockSpec(shape, idx)


@jax.jit
def sentiment_gating(x, sentiment, wse, bse, wg, bg, gamma, beta):
    """x: (B, S, d_model), sentiment: (B, S, sentiment_dim) -> (out, gate)."""
    B, S, d_model = x.shape
    sdim = sentiment.shape[-1]
    N = B * S

    x_itm = x.dtype.itemsize
    gate_dtype = x.dtype   # set to jnp.bfloat16 to cut gate write traffic
    gate_itm = jnp.dtype(gate_dtype).itemsize

    # Fold the two linears (exact algebra; only f32 summation order changes).
    wfold = jnp.dot(wse, wg, preferred_element_type=jnp.float32)       # (sdim, d_model)
    bfold = (jnp.dot(bse.reshape(1, d_model), wg,
                     preferred_element_type=jnp.float32)
             + bg.reshape(1, d_model)).astype(jnp.float32)             # (1, d_model)

    x2 = x.reshape(N, d_model)
    s2 = sentiment.reshape(N, sdim)
    if x.dtype == jnp.bfloat16:
        # bf16 MXU operands (single-pass MXU path on v5e/v6e/v7x); f32
        # accumulation is kept via preferred_element_type inside the kernel.
        s2 = s2.astype(jnp.bfloat16)
        wfold = wfold.astype(jnp.bfloat16)
    else:
        s2 = s2.astype(x.dtype)

    gamma2 = gamma.reshape(1, d_model)
    beta2 = beta.reshape(1, d_model)

    # Per-generation VMEM budget: ~75% of capacity as the Mosaic limit
    # (~48 MiB v7x, ~96 MiB v5e/v6e), ~75% of that for tile sizing headroom.
    vmem_cap = _vmem_capacity_bytes()
    vmem_limit = int(vmem_cap * 3 // 4)
    tile_budget = int(vmem_limit * 3 // 4)

    tm = _pick_tm(N, d_model, sdim, x_itm, s2.dtype.itemsize, gate_itm,
                  tile_budget)
    grid = (pl.cdiv(N, tm),)   # no host-side padding; tm divides N in practice

    row_spec_x = pl.BlockSpec((tm, d_model), lambda i: (i, 0))
    row_spec_s = pl.BlockSpec((tm, sdim), lambda i: (i, 0))

    cost = pl.CostEstimate(
        flops=2 * N * sdim * d_model + 10 * N * d_model,
        transcendentals=N * d_model,                        # sigmoid exp
        bytes_accessed=(N * d_model * x_itm                 # x in
                        + N * sdim * s2.dtype.itemsize      # sentiment in
                        + N * d_model * x_itm               # out
                        + N * d_model * gate_itm            # gate
                        + sdim * d_model * wfold.dtype.itemsize))

    out, gate = pl.pallas_call(
        _sentiment_gating_kernel,
        out_shape=(jax.ShapeDtypeStruct((N, d_model), x.dtype),
                   jax.ShapeDtypeStruct((N, d_model), gate_dtype)),
        grid_spec=pltpu.PrefetchScalarGridSpec(
            num_scalar_prefetch=0,
            grid=grid,
            in_specs=[
                row_spec_x,                      # x rows
                row_spec_s,                      # sentiment rows
                _const_spec((sdim, d_model)),    # Wfold (loop-invariant)
                _const_spec((1, d_model)),       # bfold
                _const_spec((1, d_model)),       # gamma
                _const_spec((1, d_model)),       # beta
            ],
            out_specs=[row_spec_x, row_spec_x],
        ),
        compiler_params=pltpu.CompilerParams(
            dimension_semantics=("parallel",),
            vmem_limit_bytes=vmem_limit),
        cost_estimate=cost,
    )(x2, s2, wfold, bfold, gamma2, beta2)

    return out.reshape(B, S, d_model), gate.reshape(B, S, d_model)


def sentiment_gating_ref(x, sentiment, wse, bse, wg, bg, gamma, beta):
    """Pure-JAX reference matching the PyTorch forward."""
    s_emb = sentiment @ wse + bse
    gate = jax.nn.sigmoid(s_emb @ wg + bg)
    gated = x * gate + x
    mean = jnp.mean(gated, axis=-1, keepdims=True)
    var = jnp.mean((gated - mean) ** 2, axis=-1, keepdims=True)
    out = (gated - mean) * jax.lax.rsqrt(var + 1e-5) * gamma + beta
    return out, gate


if __name__ == "__main__":
    key = jax.random.PRNGKey(0)
    B, S, d_model, sentiment_dim = 2, 8, 32, 16

    k = jax.random.split(key, 8)
    x = jax.random.normal(k[0], (B, S, d_model), dtype=jnp.float32)
    sentiment = jax.random.normal(k[1], (B, S, sentiment_dim), dtype=jnp.float32)

    # Deterministic "synthetic checkpoint" parameters (Linear-like scale).
    wse = jax.random.normal(k[2], (sentiment_dim, d_model), jnp.float32) / jnp.sqrt(sentiment_dim)
    bse = jax.random.normal(k[3], (d_model,), jnp.float32) * 0.01
    wg = jax.random.normal(k[4], (d_model, d_model), jnp.float32) / jnp.sqrt(d_model)
    bg = jax.random.normal(k[5], (d_model,), jnp.float32) * 0.01
    gamma = jnp.ones((d_model,), jnp.float32)
    beta = jnp.zeros((d_model,), jnp.float32)

    out, gate = sentiment_gating(x, sentiment, wse, bse, wg, bg, gamma, beta)
    out, gate = jax.block_until_ready((out, gate))

    out_ref, gate_ref = sentiment_gating_ref(x, sentiment, wse, bse, wg, bg, gamma, beta)
    assert jnp.allclose(out, out_ref, atol=1e-4, rtol=1e-4), "output mismatch"
    assert jnp.allclose(gate, gate_ref, atol=1e-5, rtol=1e-5), "gate mismatch"

    print("KERNEL_OK")
</pallas_src>

<mosaic_0001>
module attributes {stable_mosaic.version = 11 : i64} {
  func.func @_sentiment_gating_kernel(%arg0: i32, %arg1: memref<16x32xf32, #tpu.memory_space<vmem>>, %arg2: memref<16x16xf32, #tpu.memory_space<vmem>>, %arg3: memref<16x32xf32, #tpu.memory_space<vmem>>, %arg4: memref<1x32xf32, #tpu.memory_space<vmem>>, %arg5: memref<1x32xf32, #tpu.memory_space<vmem>>, %arg6: memref<1x32xf32, #tpu.memory_space<vmem>>, %arg7: memref<16x32xf32, #tpu.memory_space<vmem>>, %arg8: memref<16x32xf32, #tpu.memory_space<vmem>>) attributes {dimension_semantics = [#tpu.dimension_semantics<parallel>], iteration_bounds = array<i64: 1>, scalar_prefetch = 0 : i64, scratch_operands = 0 : i64, tpu.core_type = #tpu.core_type<tc>, window_params = [{transform_indices = @transform_0, window_bounds = array<i64: 16, 32>}, {transform_indices = @transform_1, window_bounds = array<i64: 16, 16>}, {pipeline_mode = #tpu.pipeline_mode<synchronous>, transform_indices = @transform_2, window_bounds = array<i64: 16, 32>}, {pipeline_mode = #tpu.pipeline_mode<synchronous>, transform_indices = @transform_3, window_bounds = array<i64: 1, 32>}, {pipeline_mode = #tpu.pipeline_mode<synchronous>, transform_indices = @transform_4, window_bounds = array<i64: 1, 32>}, {pipeline_mode = #tpu.pipeline_mode<synchronous>, transform_indices = @transform_5, window_bounds = array<i64: 1, 32>}, {transform_indices = @transform_6, window_bounds = array<i64: 16, 32>}, {transform_indices = @transform_7, window_bounds = array<i64: 16, 32>}]} {
    %c0 = arith.constant 0 : index
    %c0_0 = arith.constant 0 : index
    %0 = vector.load %arg2[%c0, %c0_0] : memref<16x16xf32, #tpu.memory_space<vmem>>, vector<16x16xf32>
    %c0_1 = arith.constant 0 : index
    %c0_2 = arith.constant 0 : index
    %1 = vector.load %arg3[%c0_1, %c0_2] : memref<16x32xf32, #tpu.memory_space<vmem>>, vector<16x32xf32>
    %cst = arith.constant dense<0.000000e+00> : vector<16x32xf32>
    %2 = tpu.matmul %0, %1, %cst {dimension_numbers = #tpu.dot_dimension_numbers<[1], [0], [0], [1], [0, 0, 1, 1], [], []>} : vector<16x16xf32>, vector<16x32xf32>, vector<16x32xf32> -> vector<16x32xf32>
    %c0_3 = arith.constant 0 : index
    %c0_4 = arith.constant 0 : index
    %3 = vector.load %arg4[%c0_3, %c0_4] : memref<1x32xf32, #tpu.memory_space<vmem>>, vector<1x32xf32>
    %4 = vector.broadcast %3 : vector<1x32xf32> to vector<16x32xf32>
    %5 = arith.addf %2, %4 : vector<16x32xf32>
    %6 = arith.negf %5 : vector<16x32xf32>
    %7 = math.exp %6 : vector<16x32xf32>
    %cst_5 = arith.constant 1.000000e+00 : f32
    %8 = vector.broadcast %cst_5 : f32 to vector<16x32xf32>
    %9 = arith.addf %8, %7 : vector<16x32xf32>
    %10 = arith.divf %8, %9 : vector<16x32xf32>
    %c0_6 = arith.constant 0 : index
    %c0_7 = arith.constant 0 : index
    %11 = vector.load %arg1[%c0_6, %c0_7] : memref<16x32xf32, #tpu.memory_space<vmem>>, vector<16x32xf32>
    %cst_8 = arith.constant 1.000000e+00 : f32
    %12 = vector.broadcast %cst_8 : f32 to vector<16x32xf32>
    %13 = arith.addf %10, %12 : vector<16x32xf32>
    %14 = arith.mulf %11, %13 : vector<16x32xf32>
    %cst_9 = arith.constant dense<0.000000e+00> : vector<16xf32>
    %15 = vector.multi_reduction <add>, %14, %cst_9 [1] : vector<16x32xf32> to vector<16xf32>
    %16 = vector.shape_cast %15 : vector<16xf32> to vector<16x1xf32>
    %cst_10 = arith.constant 3.200000e+01 : f32
    %17 = vector.broadcast %cst_10 : f32 to vector<16x1xf32>
    %18 = arith.divf %16, %17 : vector<16x1xf32>
    %19 = vector.broadcast %18 : vector<16x1xf32> to vector<16x32xf32>
    %20 = arith.subf %14, %19 : vector<16x32xf32>
    %21 = arith.mulf %20, %20 : vector<16x32xf32>
    %cst_11 = arith.constant dense<0.000000e+00> : vector<16xf32>
    %22 = vector.multi_reduction <add>, %21, %cst_11 [1] : vector<16x32xf32> to vector<16xf32>
    %23 = vector.shape_cast %22 : vector<16xf32> to vector<16x1xf32>
    %cst_12 = arith.constant 3.200000e+01 : f32
    %24 = vector.broadcast %cst_12 : f32 to vector<16x1xf32>
    %25 = arith.divf %23, %24 : vector<16x1xf32>
    %cst_13 = arith.constant 9.99999974E-6 : f32
    %26 = vector.broadcast %cst_13 : f32 to vector<16x1xf32>
    %27 = arith.addf %25, %26 : vector<16x1xf32>
    %28 = math.rsqrt %27 : vector<16x1xf32>
    %29 = vector.broadcast %28 : vector<16x1xf32> to vector<16x32xf32>
    %30 = arith.mulf %20, %29 : vector<16x32xf32>
    %c0_14 = arith.constant 0 : index
    %c0_15 = arith.constant 0 : index
    %31 = vector.load %arg5[%c0_14, %c0_15] : memref<1x32xf32, #tpu.memory_space<vmem>>, vector<1x32xf32>
    %32 = vector.broadcast %31 : vector<1x32xf32> to vector<16x32xf32>
    %33 = arith.mulf %30, %32 : vector<16x32xf32>
    %c0_16 = arith.constant 0 : index
    %c0_17 = arith.constant 0 : index
    %34 = vector.load %arg6[%c0_16, %c0_17] : memref<1x32xf32, #tpu.memory_space<vmem>>, vector<1x32xf32>
    %35 = vector.broadcast %34 : vector<1x32xf32> to vector<16x32xf32>
    %36 = arith.addf %33, %35 : vector<16x32xf32>
    %c0_18 = arith.constant 0 : index
    %c0_19 = arith.constant 0 : index
    %37 = vector.load %arg7[%c0_18, %c0_19] : memref<16x32xf32, #tpu.memory_space<vmem>>, vector<16x32xf32>
    tpu.vector_store %arg7[%c0_18, %c0_19], %36 {strides = array<i32>} : memref<16x32xf32, #tpu.memory_space<vmem>>, vector<16x32xf32>,
    %c0_20 = arith.constant 0 : index
    %c0_21 = arith.constant 0 : index
    %38 = vector.load %arg8[%c0_20, %c0_21] : memref<16x32xf32, #tpu.memory_space<vmem>>, vector<16x32xf32>
    tpu.vector_store %arg8[%c0_20, %c0_21], %10 {strides = array<i32>} : memref<16x32xf32, #tpu.memory_space<vmem>>, vector<16x32xf32>,
    return
  }
  func.func @transform_0(%arg0: i32) -> (i32, i32) {
    %c0_i32 = arith.constant 0 : i32
    %c0_i32_0 = arith.constant 0 : i32
    return %arg0, %c0_i32 : i32, i32
  }
  func.func @transform_1(%arg0: i32) -> (i32, i32) {
    %c0_i32 = arith.constant 0 : i32
    %c0_i32_0 = arith.constant 0 : i32
    return %arg0, %c0_i32 : i32, i32
  }
  func.func @transform_2(%arg0: i32) -> (i32, i32) {
    %c0_i32 = arith.constant 0 : i32
    %c0_i32_0 = arith.constant 0 : i32
    %c0_i32_1 = arith.constant 0 : i32
    return %c0_i32, %c0_i32_0 : i32, i32
  }
  func.func @transform_3(%arg0: i32) -> (i32, i32) {
    %c0_i32 = arith.constant 0 : i32
    %c0_i32_0 = arith.constant 0 : i32
    %c0_i32_1 = arith.constant 0 : i32
    return %c0_i32, %c0_i32_0 : i32, i32
  }
  func.func @transform_4(%arg0: i32) -> (i32, i32) {
    %c0_i32 = arith.constant 0 : i32
    %c0_i32_0 = arith.constant 0 : i32
    %c0_i32_1 = arith.constant 0 : i32
    return %c0_i32, %c0_i32_0 : i32, i32
  }
  func.func @transform_5(%arg0: i32) -> (i32, i32) {
    %c0_i32 = arith.constant 0 : i32
    %c0_i32_0 = arith.constant 0 : i32
    %c0_i32_1 = arith.constant 0 : i32
    return %c0_i32, %c0_i32_0 : i32, i32
  }
  func.func @transform_6(%arg0: i32) -> (i32, i32) {
    %c0_i32 = arith.constant 0 : i32
    %c0_i32_0 = arith.constant 0 : i32
    return %arg0, %c0_i32 : i32, i32
  }
  func.func @transform_7(%arg0: i32) -> (i32, i32) {
    %c0_i32 = arith.constant 0 : i32
    %c0_i32_0 = arith.constant 0 : i32
    return %arg0, %c0_i32 : i32, i32
  }
}

</mosaic_0001>

<bundles_post_ra>
// kernel: sentiment_gating.1
= control target key start
LH: loop header
LB: loop body
LE: loop exit
PB: predicated region body
PF: predicated region fallthrough
CT: control target
= control target key end

     0   :  { %13 = vsyncpa [#allocation3], 0  ;;  %vm35_vm0 = vcmask 130048   ;;  %s385_s0 = inlined_call_operand.vmem [shape: f32[16,32], index: 0, kind: input, shape index: {}]   ;;  %s386_s1 = inlined_call_operand.vmem [shape: f32[16,16], index: 1, kind: input, shape index: {}]   ;;  %s387_s2 = inlined_call_operand.vmem [shape: f32[16,32], index: 2, kind: input, shape index: {}]   ;;  %s388_s3 = inlined_call_operand.vmem [shape: f32[1,32], index: 3, kind: input, shape index: {}]   ;;  %s389_s4 = inlined_call_operand.vmem [shape: f32[1,32], index: 4, kind: input, shape index: {}]   ;;  %s390_s5 = inlined_call_operand.vmem [shape: f32[1,32], index: 5, kind: input, shape index: {}]   ;;  %s391_s6 = inlined_call_operand.hbm [shape: f32[16,32], index: 6, kind: output, shape index: {0}]   ;;  %s392_s7 = inlined_call_operand.hbm [shape: f32[16,32], index: 7, kind: output, shape index: {1}]  }
   0x1   :  { %v30_v0 = vld [vmem:[%s387_s2 + $0x8] sm:$0xff]  ;;  %v29_v1 = vld [vmem:[%s387_s2] sm:$0xff] }
   0x2   :  { %56 = vmatpush.msra.mxu0 %v30_v0  ;;  %217 = vmatpush.msra.mxu1 %v30_v0  ;;  %v27_v2 = vld [vmem:[%s386_s1] sm:$0xff]  ;;  %v28_v3 = vld [vmem:[%s386_s1 + $0x8] sm:$0xff] }
   0x3   :  { %14 = vsyncpa [#allocation5], 0  ;;  %v224_v4 = vld [vmem:[%s388_s3] ss:$0 sm:$0xff]  ;;  %vm109_vm6 = vcmask 261120   ;;  %v104_v40 = vld [vmem:[%s385_s0 + $0x8] sm:$0xff] }
   0x4   :  { %57 = vmatpush.msra.mxu0 %v29_v1  ;;  %218 = vmatpush.msra.mxu1 %v29_v1  ;;  %v103_v33 = vld [vmem:[%s385_s0] sm:$0xff]  ;;  %v293_v43 = vmov 32.0   ;;  %s294_s0 = smov [#allocation4]   ;;  %s196_s15 = sshll.u32 %s392_s7, 4  ;;  %s197_s15 = int_to_ptr.hbm [resolvable:$true] %s196_s15 }
   0x5   :  { %213 = vmatmul.msk.f32.vlgmr.msra.gmra.mxu0 %vm35_vm0, %v27_v2  ;;  %214 = vmatmul.msk.f32.vlgmr.msra.gmra.mxu1 %vm35_vm0, %v28_v3  ;;  %s194_s12 = sshll.u32 %s294_s0, 4  ;;  %s295_s16 = smov 128   ;;  %s195_s12 = int_to_ptr.vmem [resolvable:$true] %s194_s12 }
   0x6   :  { %s296_s17 = smov 8   ;;  %s183_s24 = sshll.u32 %s391_s6, 4  ;;  %s184_s24 = int_to_ptr.hbm [resolvable:$true] %s183_s24 }
  0x82   :  { %v59_v5 = vpop.f32.mrf.mxu0  ;;  %v62_v6 = vpop.f32.mrf.mxu1 }
  0x83   :  { %v60_v7 = vadd.f32 %v224_v4, %v59_v5  ;;  %v63_v8 = vadd.f32 %v224_v4, %v62_v6 }
  0x85   :  { %v215_v9 = vmul.f32 -1.442695, %v60_v7  ;;  %v216_v10 = vmul.f32 -1.442695, %v63_v8 }
  0x87   :  { %227 = vpow2.f32 %v215_v9 }
  0x88   :  { %229 = vpow2.f32 %v216_v10  ;;  %v225_v10 = vld [vmem:[%s389_s4] ss:$0 sm:$0xff]  ;;  %s297_s4 = smov [#allocation2]  }
  0x89   :  { %s181_s21 = sshll.u32 %s297_s4, 4  ;;  %s182_s21 = int_to_ptr.vmem [resolvable:$true] %s181_s21 }
  0x8d   :  { %v228_v11 = vpop.eup %227 }
  0x8e   :  { %v230_v12 = vpop.eup %229  ;;  %v71_v13 = vadd.f32 1.0, %v228_v11 }
  0x8f   :  { %v72_v14 = vadd.f32 1.0, %v230_v12 }
  0x90   :  { %231 = vrcp.f32 %v71_v13  ;;  %v84_v20 = vand.u32 2147483648, %v71_v13  ;;  %v82_v23 = vand.u32 2147483647, %v71_v13  ;;  %vm78_vm4 = vweird.f32 %v71_v13 }
  0x91   :  { %233 = vrcp.f32 %v72_v14  ;;  %v99_v24 = vand.u32 2147483648, %v72_v14  ;;  %vm93_vm2 = vweird.f32 %v72_v14  ;;  %v97_v26 = vand.u32 2147483647, %v72_v14 }
  0x92   :  { %v85_v28 = vor.u32 1.1754944e-38, %v84_v20  ;;  %vm83_vm7 = vcmp.eq.f32.partialorder %v82_v23, 8.507059e+37  ;;  %235 = vrcp.f32 %v293_v43 }
  0x93   :  { %v100_v31 = vor.u32 1.1754944e-38, %v99_v24  ;;  %vm98_vm9 = vcmp.eq.f32.partialorder %v97_v26, 8.507059e+37 }
  0x96   :  { %v232_v15 = vpop.eup %231 }
  0x97   :  { %v234_v16 = vpop.eup %233  ;;  %v74_v17 = vmul.f32 %v232_v15, %v71_v13  ;;  %vm79_vm1 = vweird.f32 %v232_v15 }
  0x98   :  { %v89_v18 = vmul.f32 %v234_v16, %v72_v14  ;;  %vm94_vm3 = vweird.f32 %v234_v16  ;;  %vm80_vm5 = vmor %vm78_vm4, %vm79_vm1  ;;  %v236_v44 = vpop.eup %235  ;;  %v226_v14 = vld [vmem:[%s390_s5] ss:$0 sm:$0xff] }
  0x99   :  { %v75_v19 = vsub.f32 1.0, %v74_v17  ;;  %vm95_vm8 = vmor %vm93_vm2, %vm94_vm3  ;;  %v117_v45 = vmul.f32 32.0, %v236_v44  ;;  %vm121_vm10 = vweird.f32 %v236_v44 }
  0x9a   :  { %v90_v21 = vsub.f32 1.0, %v89_v18 }
  0x9b   :  { %v76_v22 = vmul.f32 %v232_v15, %v75_v19  ;;  %v118_v46 = vsub.f32 1.0, %v117_v45 }
  0x9c   :  { %v91_v25 = vmul.f32 %v234_v16, %v90_v21 }
  0x9d   :  { %v77_v27 = vadd.f32 %v232_v15, %v76_v22  ;;  %v119_v47 = vmul.f32 %v236_v44, %v118_v46 }
  0x9e   :  { %v92_v29 = vadd.f32 %v234_v16, %v91_v25 }
  0x9f   :  { %v81_v30 = vsel %vm80_vm5, %v232_v15, %v77_v27  ;;  %v120_v48 = vadd.f32 %v236_v44, %v119_v47 }
  0xa0   :  { %v86_v32 = vsel %vm83_vm7, %v85_v28, %v81_v30  ;;  %v96_v34 = vsel %vm95_vm8, %v234_v16, %v92_v29 }
  0xa1   :  { %v105_v35 = vadd.f32 1.0, %v86_v32  ;;  %175 = vst.msk [vmem:[#allocation4] sm:$0xff] %vm109_vm6, %v86_v32  ;;  %v101_v36 = vsel %vm98_vm9, %v100_v31, %v96_v34  ;;  %v122_v49 = vsel %vm121_vm10, %v236_v44, %v120_v48 }
  0xa2   :  { %176 = vst.msk [vmem:[#allocation4 + $0x8] sm:$0xff] %vm109_vm6, %v101_v36  ;;  %v106_v39 = vadd.f32 1.0, %v101_v36 }
  0xa3   :  { %v107_v37 = vmul.f32 %v105_v35, %v103_v33  ;;  %202 = dma.vmem_to_hbm [thread:$0]  %s195_s12, 256, %s197_s15, [#allocation5], %s295_s16, %s295_s16, %s296_s17  }
  0xa4   :  { %v108_v41 = vmul.f32 %v106_v39, %v104_v40 }
  0xa5   :  { %v110_v38 = vsel %vm109_vm6, %v107_v37, 0.0 }
  0xa6   :  { %111 = vadd.xlane.f32.xlu0 %v110_v38  ;;  %v113_v42 = vsel %vm109_vm6, %v108_v41, 0.0 }
  0xae   :  { %114 = vadd.xlane.f32.xlu0 %v113_v42 }
 0x119   :  { %v112_v50 = vpop.xlane.xlu0 %111 }
 0x11a   :  { %v123_v51 = vmul.f32 %v122_v49, %v112_v50 }
 0x11c   :  { %v125_v52 = vsub.f32 %v107_v37, %v123_v51 }
 0x11e   :  { %v127_v53 = vmul.f32 %v125_v52, %v125_v52 }
 0x120   :  { %v129_v54 = vsel %vm109_vm6, %v127_v53, 0.0 }
 0x121   :  { %130 = vadd.xlane.f32.xlu1 %v129_v54  ;;  %v115_v55 = vpop.xlane.xlu0 %114 }
 0x122   :  { %v124_v56 = vmul.f32 %v122_v49, %v115_v55 }
 0x124   :  { %v126_v57 = vsub.f32 %v108_v41, %v124_v56 }
 0x126   :  { %v128_v58 = vmul.f32 %v126_v57, %v126_v57 }
 0x128   :  { %v132_v59 = vsel %vm109_vm6, %v128_v58, 0.0 }
 0x129   :  { %133 = vadd.xlane.f32.xlu1 %v132_v59 }
 0x194   :  { %v131_v60 = vpop.xlane.xlu1 %130 }
 0x195   :  { %v135_v61 = vmul.f32 %v131_v60, %v122_v49 }
 0x197   :  { %v137_v62 = vadd.f32 1e-05, %v135_v61 }
 0x199   :  { %237 = vrsqrt.f32 %v137_v62  ;;  %vm145_vm12 = vweird.f32 %v137_v62 }
 0x19c   :  { %v134_v63 = vpop.xlane.xlu1 %133 }
 0x19d   :  { %v136_v0 = vmul.f32 %v134_v63, %v122_v49 }
 0x19f   :  { %v238_v1 = vpop.eup %237  ;;  %v138_v2 = vadd.f32 1e-05, %v136_v0 }
 0x1a0   :  { %v140_v3 = vmul.f32 %v238_v1, %v137_v62  ;;  %vm146_vm11 = vweird.f32 %v238_v1 }
 0x1a1   :  { %239 = vrsqrt.f32 %v138_v2  ;;  %vm147_vm13 = vmor %vm145_vm12, %vm146_vm11  ;;  %vm155_vm15 = vweird.f32 %v138_v2 }
 0x1a2   :  { %v141_v4 = vmul.f32 %v238_v1, %v140_v3 }
 0x1a4   :  { %v142_v5 = vmul.f32 0.5, %v141_v4 }
 0x1a6   :  { %v143_v6 = vsub.f32 1.5, %v142_v5 }
 0x1a7   :  { %v240_v7 = vpop.eup %239 }
 0x1a8   :  { %v144_v8 = vmul.f32 %v238_v1, %v143_v6  ;;  %v150_v9 = vmul.f32 %v240_v7, %v138_v2  ;;  %vm156_vm14 = vweird.f32 %v240_v7 }
 0x1a9   :  { %vm157_vm0 = vmor %vm155_vm15, %vm156_vm14 }
 0x1aa   :  { %v148_v11 = vsel %vm147_vm13, %v238_v1, %v144_v8  ;;  %v151_v12 = vmul.f32 %v240_v7, %v150_v9 }
 0x1ab   :  { %v159_v13 = vmul.f32 %v148_v11, %v125_v52 }
 0x1ac   :  { %v152_v15 = vmul.f32 0.5, %v151_v12 }
 0x1ad   :  { %v165_v16 = vmul.f32 %v225_v10, %v159_v13 }
 0x1ae   :  { %v153_v17 = vsub.f32 1.5, %v152_v15 }
 0x1af   :  { %v171_v18 = vadd.f32 %v226_v14, %v165_v16 }
 0x1b0   :  { %v154_v19 = vmul.f32 %v240_v7, %v153_v17 }
 0x1b1   :  { %173 = vst.msk [vmem:[#allocation2] sm:$0xff] %vm109_vm6, %v171_v18 }
 0x1b2   :  { %v158_v20 = vsel %vm157_vm0, %v240_v7, %v154_v19 }
 0x1b3   :  { %v160_v21 = vmul.f32 %v158_v20, %v126_v57 }
 0x1b5   :  { %v166_v22 = vmul.f32 %v225_v10, %v160_v21 }
 0x1b7   :  { %v172_v23 = vadd.f32 %v226_v14, %v166_v22 }
 0x1b9   :  { %174 = vst.msk [vmem:[#allocation2 + $0x8] sm:$0xff] %vm109_vm6, %v172_v23 }
 0x1ba   :  { %189 = dma.vmem_to_hbm [thread:$0]  %s182_s21, 256, %s184_s24, [#allocation3], %s295_s16, %s295_s16, %s296_s17  }
 0x1bb   :  { %289 = dma.done.wait [#allocation3], 256  }
 0x1bc   :  { %290 = vsyncadd [#allocation3], 4294967040 }
 0x1bd   :  { %291 = dma.done.wait [#allocation5], 256  }
 0x1be   :  { %292 = vsyncadd [#allocation5], 4294967040 }
 0x1bf   :  { %211 = vsyncpa [#allocation3], 1 }
 0x1c0   :  { %212 = vsyncpa [#allocation5], 1 }

</bundles_post_ra>
